<compile_context>
chip_gen: v7x
topology: tpu7x:2x2x1
jax: 0.10.0
libtpu: 0.0.40
codegen_flags: <defaults>
</compile_context>

<pallas_src>
import math
from functools import partial

import jax
import jax.numpy as jnp
from jax.experimental import pallas as pl
from jax.experimental.pallas import tpu as pltpu

LANE = 128             # vreg lane width
SUB = 8                # vreg sublane count (f32)
NCORES = 2             # leading "parallel" grid axis (uses both TCs on v7x)
MAX_BLOCK_ROWS = 2048  # (2048,128) f32 tile = 1 MiB; <= ~6 MiB live VMEM total


def _round_up(x, m):
    return ((x + m - 1) // m) * m


def _row_align(*dtypes):
    """Block-row alignment: native sublane tile of the narrowest dtype involved."""
    a = SUB
    for d in dtypes:
        bits = jnp.dtype(d).itemsize * 8
        a = max(a, SUB * max(1, 32 // bits))   # f32->8, bf16->16, int8->32
    return a


def _pad_element_loss(gamma, pos_weight, label_smoothing):
    """Loss the kernel computes for a padded element (p=0, t=0).

    Exactly 0 for any gamma > 0; only gamma == 0 (or a pathological non-integer
    gamma with label smoothing) needs a nonzero correction.
    """
    alpha = 1.0 if pos_weight is None else (1.0 - float(pos_weight))
    ls = float(label_smoothing) if label_smoothing else 0.0
    t_s = min(max(0.0, ls), 1.0 - ls)       # clamp(0, ls, 1-ls)
    ce = 100.0 * t_s                        # -(t_s*(-100) + (1-t_s)*log(1))
    g = float(gamma)
    if g == 0.0:
        focal = 1.0
    elif g.is_integer() and 0 < g <= 8:
        focal = 0.0                         # (1 - pt)^g with 1-pt == 0
    else:
        focal = math.exp(-100.0 * g)        # exp(g * clamped log) path
    return alpha * focal * ce


def _focal_kernel(p_ref, t_ref, *refs, gamma, pos_weight, label_smoothing,
                  want_elem, want_lsum, want_psum):
    refs = list(refs)
    loss_ref = refs.pop(0) if want_elem else None
    lsum_ref = refs.pop(0) if want_lsum else None
    psum_ref = refs.pop(0) if want_psum else None
    acc_loss = refs.pop(0) if want_lsum else None
    acc_pos = refs.pop(0) if want_psum else None

    if want_lsum or want_psum:
        i = pl.program_id(1)

        @pl.when(i == 0)
        def _():
            if want_lsum:
                acc_loss[...] = jnp.zeros_like(acc_loss)
            if want_psum:
                acc_pos[...] = jnp.zeros_like(acc_pos)

    p = p_ref[...].astype(jnp.float32)       # predicted probabilities in [0, 1]
    t = t_ref[...].astype(jnp.float32)       # original (un-smoothed) targets

    pos = t == 1.0                           # positive_indices (original target)

    if pos_weight is not None:
        alpha = jnp.where(pos, jnp.float32(pos_weight), jnp.float32(1.0 - pos_weight))
    else:
        alpha = None

    if label_smoothing:
        t_s = jnp.clip(t, jnp.float32(label_smoothing), jnp.float32(1.0 - label_smoothing))
    else:
        t_s = t

    # F.binary_cross_entropy clamps log terms at -100.
    log_p = jnp.maximum(jnp.log(p), jnp.float32(-100.0))
    log_1mp = jnp.maximum(jnp.log(1.0 - p), jnp.float32(-100.0))
    ce = -(t_s * log_p + (1.0 - t_s) * log_1mp)

    # Focal modulating factor (1 - pt)^gamma with pt = where(t_s==1, p, 1-p).
    is_one = t_s == 1.0
    g = float(gamma)
    if g == 0.0:
        focal = None
    elif g.is_integer() and 0 < g <= 8:
        one_m_pt = jnp.where(is_one, 1.0 - p, p)
        focal = one_m_pt
        for _ in range(int(g) - 1):          # repeated multiplies, no EUP
            focal = focal * one_m_pt
    else:
        # exp(g * log(1-pt)); re-use the clamped BCE logs (one extra EUP op).
        log_1m_pt = jnp.where(is_one, log_1mp, log_p)
        focal = jnp.exp(jnp.float32(g) * log_1m_pt)

    loss = ce
    if focal is not None:
        loss = focal * loss
    if alpha is not None:
        loss = alpha * loss

    if want_elem:
        loss_ref[...] = loss.astype(loss_ref.dtype)

    # Vreg-shaped accumulation: fold (block_rows,128) into (8,128) with VALU adds.
    if want_lsum:
        acc_loss[...] += loss.reshape(-1, SUB, LANE).sum(axis=0)
    if want_psum:
        acc_pos[...] += jnp.where(pos, jnp.float32(1.0), jnp.float32(0.0)).reshape(
            -1, SUB, LANE).sum(axis=0)

    if want_lsum or want_psum:
        @pl.when(i == pl.num_programs(1) - 1)
        def _():
            if want_lsum:
                lsum_ref[0] = acc_loss[...]
            if want_psum:
                psum_ref[0] = acc_pos[...]


def focal_loss_pallas(inputs, targets, gamma, pos_weight=None, label_smoothing=None,
                      reduction="mean", normalize=False):
    orig_shape = inputs.shape
    numel = 1
    for d in orig_shape:
        numel *= int(d)

    x = inputs.reshape(-1)
    t = targets.reshape(-1)
    if not jnp.issubdtype(x.dtype, jnp.floating):
        x = x.astype(jnp.float32)
    if not jnp.issubdtype(t.dtype, jnp.floating):
        t = t.astype(jnp.float32)

    want_elem = (reduction == "none")
    want_lsum = (reduction in ("mean", "sum"))
    want_psum = bool(normalize)

    out_dtype = x.dtype                      # elementwise loss keeps input dtype

    align = _row_align(x.dtype, t.dtype, out_dtype if want_elem else jnp.float32)

    rows = pl.cdiv(numel, LANE)
    rows_per_core = max(pl.cdiv(rows, NCORES), 1)
    block_rows = min(MAX_BLOCK_ROWS, _round_up(rows_per_core, align))
    n_inner = pl.cdiv(rows_per_core, block_rows)
    rows_pad = NCORES * n_inner * block_rows
    pad = rows_pad * LANE - numel

    if pad:
        # Loss-neutral pad (p=0, t=0); analytic correction applied below.
        x = jnp.pad(x, (0, pad))
        t = jnp.pad(t, (0, pad))
    x2 = x.reshape(rows_pad, LANE)
    t2 = t.reshape(rows_pad, LANE)

    kernel = partial(
        _focal_kernel,
        gamma=float(gamma),
        pos_weight=None if pos_weight is None else float(pos_weight),
        label_smoothing=None if not label_smoothing else float(label_smoothing),
        want_elem=want_elem, want_lsum=want_lsum, want_psum=want_psum,
    )

    data_spec = pl.BlockSpec((block_rows, LANE), lambda c, i: (c * n_inner + i, 0))
    sum_spec = pl.BlockSpec((1, SUB, LANE), lambda c, i: (c, 0, 0))

    out_shapes, out_specs, scratch_shapes = [], [], []
    if want_elem:
        out_shapes.append(jax.ShapeDtypeStruct((rows_pad, LANE), out_dtype))
        out_specs.append(data_spec)
    if want_lsum:
        out_shapes.append(jax.ShapeDtypeStruct((NCORES, SUB, LANE), jnp.float32))
        out_specs.append(sum_spec)
    if want_psum:
        out_shapes.append(jax.ShapeDtypeStruct((NCORES, SUB, LANE), jnp.float32))
        out_specs.append(sum_spec)
    if want_lsum:
        scratch_shapes.append(pltpu.VMEM((SUB, LANE), jnp.float32))
    if want_psum:
        scratch_shapes.append(pltpu.VMEM((SUB, LANE), jnp.float32))

    outs = pl.pallas_call(
        kernel,
        out_shape=tuple(out_shapes),
        grid_spec=pltpu.PrefetchScalarGridSpec(
            num_scalar_prefetch=0,
            grid=(NCORES, n_inner),
            in_specs=[data_spec, data_spec],
            out_specs=out_specs,
            scratch_shapes=scratch_shapes,
        ),
        compiler_params=pltpu.CompilerParams(
            dimension_semantics=("parallel", "arbitrary")),
    )(x2, t2)

    outs = list(outs)
    idx = 0
    loss_el = loss_sum = pos_sum = None
    if want_elem:
        loss_el = outs[idx]; idx += 1
    if want_lsum:
        loss_sum = jnp.sum(outs[idx]); idx += 1
    if want_psum:
        pos_sum = jnp.sum(outs[idx]); idx += 1

    if want_lsum and pad:
        loss_sum = loss_sum - jnp.float32(pad) * jnp.float32(
            _pad_element_loss(gamma, pos_weight, label_smoothing))

    denom = jnp.maximum(pos_sum, jnp.float32(1.0)) if normalize else None

    if reduction == "mean":
        out = loss_sum / jnp.float32(numel)
        if normalize:
            out = out / denom
        return out
    elif reduction == "sum":
        out = loss_sum
        if normalize:
            out = out / denom
        return out
    else:  # 'none'
        loss = loss_el.reshape(-1)[:numel].reshape(orig_shape)
        if normalize:
            loss = loss / denom.astype(loss.dtype)
        return loss


class FocalLossPallas:
    """Mirrors combustion.nn.loss.focal._FocalLoss forward pass."""

    def __init__(self, gamma, pos_weight=None, label_smoothing=None,
                 reduction: str = "mean", normalize: bool = False):
        self.gamma = gamma
        self.alpha = pos_weight
        self.label_smoothing = label_smoothing
        self.reduction = reduction
        self.normalize = normalize

    def __call__(self, inputs, targets):
        return focal_loss_pallas(inputs, targets, self.gamma, self.alpha,
                                 self.label_smoothing, self.reduction, self.normalize)


def _focal_loss_ref(p, t, gamma, pos_weight, label_smoothing, reduction, normalize):
    # pure-JAX reference replicating the PyTorch semantics
    p = p.astype(jnp.float32)
    t = t.astype(jnp.float32)
    pos = (t == 1.0)
    if pos_weight is not None:
        alpha = jnp.where(pos, pos_weight, 1.0 - pos_weight)
    else:
        alpha = jnp.ones_like(p)
    t_s = jnp.clip(t, label_smoothing, 1.0 - label_smoothing) if label_smoothing else t
    pt = jnp.where(t_s == 1.0, p, 1.0 - p)
    ce = -(t_s * jnp.maximum(jnp.log(p), -100.0)
           + (1.0 - t_s) * jnp.maximum(jnp.log(1.0 - p), -100.0))
    loss = alpha * (1.0 - pt) ** gamma * ce
    if normalize:
        loss = loss / jnp.maximum(pos.sum().astype(jnp.float32), 1.0)
    if reduction == "mean":
        return loss.mean()
    if reduction == "sum":
        return loss.sum()
    return loss


if __name__ == "__main__":
    key = jax.random.PRNGKey(0)
    k1, k2, k3, k4 = jax.random.split(key, 4)

    B, C, H, W = 2, 4, 16, 16
    # probabilities in (0, 1) as the module expects post-sigmoid inputs
    inputs = jax.nn.sigmoid(jax.random.normal(k1, (B, C, H, W), dtype=jnp.float32))
    targets = (jax.random.uniform(k2, (B, C, H, W)) > 0.7).astype(jnp.float32)

    # reduction='mean' with normalize / pos_weight / label smoothing
    module = FocalLossPallas(gamma=2.0, pos_weight=0.25, label_smoothing=0.1,
                             reduction="mean", normalize=True)
    loss = module(inputs, targets)
    jax.block_until_ready(loss)
    ref = _focal_loss_ref(inputs, targets, 2.0, 0.25, 0.1, "mean", True)
    assert jnp.allclose(loss, ref, rtol=1e-5, atol=1e-6), (loss, ref)

    # reduction='none' path (exercises the elementwise-output kernel variant)
    module_none = FocalLossPallas(gamma=2.0, pos_weight=0.25, label_smoothing=None,
                                  reduction="none", normalize=False)
    loss_el = module_none(inputs, targets)
    jax.block_until_ready(loss_el)
    ref_el = _focal_loss_ref(inputs, targets, 2.0, 0.25, None, "none", False)
    assert jnp.allclose(loss_el, ref_el, rtol=1e-4, atol=1e-6)

    # reduction='sum', gamma=0, ragged shape (exercises the padding correction)
    inputs_r = jax.nn.sigmoid(jax.random.normal(k3, (3, 5, 7), dtype=jnp.float32))
    targets_r = (jax.random.uniform(k4, (3, 5, 7)) > 0.6).astype(jnp.float32)
    module_sum = FocalLossPallas(gamma=0.0, pos_weight=0.25, label_smoothing=0.1,
                                 reduction="sum", normalize=False)
    loss_s = module_sum(inputs_r, targets_r)
    jax.block_until_ready(loss_s)
    ref_s = _focal_loss_ref(inputs_r, targets_r, 0.0, 0.25, 0.1, "sum", False)
    assert jnp.allclose(loss_s, ref_s, rtol=1e-4, atol=1e-4), (loss_s, ref_s)

    print("KERNEL_OK")
</pallas_src>

<mosaic_0001>
module attributes {stable_mosaic.version = 11 : i64} {
  func.func @_focal_kernel(%arg0: i32, %arg1: i32, %arg2: memref<8x128xf32, #tpu.memory_space<vmem>>, %arg3: memref<8x128xf32, #tpu.memory_space<vmem>>, %arg4: memref<1x8x128xf32, #tpu.memory_space<vmem>>, %arg5: memref<1x8x128xf32, #tpu.memory_space<vmem>>, %arg6: memref<8x128xf32, #tpu.memory_space<vmem>>, %arg7: memref<8x128xf32, #tpu.memory_space<vmem>>) attributes {dimension_semantics = [#tpu.dimension_semantics<parallel>, #tpu.dimension_semantics<arbitrary>], iteration_bounds = array<i64: 2, 1>, scalar_prefetch = 0 : i64, scratch_operands = 2 : i64, tpu.core_type = #tpu.core_type<tc>, window_params = [{transform_indices = @transform_0, window_bounds = array<i64: 8, 128>}, {transform_indices = @transform_1, window_bounds = array<i64: 8, 128>}, {transform_indices = @transform_2, window_bounds = array<i64: 1, 8, 128>}, {transform_indices = @transform_3, window_bounds = array<i64: 1, 8, 128>}]} {
    %c0_i32 = arith.constant 0 : i32
    %0 = arith.cmpi eq, %arg1, %c0_i32 : i32
    %1 = arith.extui %0 : i1 to i32
    %c0_i32_0 = arith.constant 0 : i32
    %2 = arith.cmpi ne, %1, %c0_i32_0 : i32
    scf.if %2 {
      %cst_29 = arith.constant 0.000000e+00 : f32
      %53 = vector.broadcast %cst_29 : f32 to vector<8x128xf32>
      %c0_30 = arith.constant 0 : index
      %c0_31 = arith.constant 0 : index
      %54 = vector.load %arg6[%c0_30, %c0_31] : memref<8x128xf32, #tpu.memory_space<vmem>>, vector<8x128xf32>
      tpu.vector_store %arg6[%c0_30, %c0_31], %53 {strides = array<i32>} : memref<8x128xf32, #tpu.memory_space<vmem>>, vector<8x128xf32>,
      %cst_32 = arith.constant 0.000000e+00 : f32
      %55 = vector.broadcast %cst_32 : f32 to vector<8x128xf32>
      %c0_33 = arith.constant 0 : index
      %c0_34 = arith.constant 0 : index
      %56 = vector.load %arg7[%c0_33, %c0_34] : memref<8x128xf32, #tpu.memory_space<vmem>>, vector<8x128xf32>
      tpu.vector_store %arg7[%c0_33, %c0_34], %55 {strides = array<i32>} : memref<8x128xf32, #tpu.memory_space<vmem>>, vector<8x128xf32>,
    } else {
    }
    %c0 = arith.constant 0 : index
    %c0_1 = arith.constant 0 : index
    %3 = vector.load %arg2[%c0, %c0_1] : memref<8x128xf32, #tpu.memory_space<vmem>>, vector<8x128xf32>
    %c0_2 = arith.constant 0 : index
    %c0_3 = arith.constant 0 : index
    %4 = vector.load %arg3[%c0_2, %c0_3] : memref<8x128xf32, #tpu.memory_space<vmem>>, vector<8x128xf32>
    %cst = arith.constant 1.000000e+00 : f32
    %5 = vector.broadcast %cst : f32 to vector<8x128xf32>
    %6 = arith.cmpf oeq, %4, %5 : vector<8x128xf32>
    %cst_4 = arith.constant 2.500000e-01 : f32
    %cst_5 = arith.constant 7.500000e-01 : f32
    %7 = vector.broadcast %cst_4 : f32 to vector<8x128xf32>
    %8 = vector.broadcast %cst_5 : f32 to vector<8x128xf32>
    %9 = arith.select %6, %7, %8 : vector<8x128xi1>, vector<8x128xf32>
    %cst_6 = arith.constant 1.000000e-01 : f32
    %cst_7 = arith.constant 0.899999976 : f32
    %10 = vector.broadcast %cst_6 : f32 to vector<8x128xf32>
    %11 = arith.maximumf %10, %4 : vector<8x128xf32>
    %12 = vector.broadcast %cst_7 : f32 to vector<8x128xf32>
    %13 = arith.minimumf %12, %11 : vector<8x128xf32>
    %14 = math.log %3 : vector<8x128xf32>
    %cst_8 = arith.constant -1.000000e+02 : f32
    %15 = vector.broadcast %cst_8 : f32 to vector<8x128xf32>
    %16 = arith.maximumf %14, %15 : vector<8x128xf32>
    %cst_9 = arith.constant 1.000000e+00 : f32
    %17 = vector.broadcast %cst_9 : f32 to vector<8x128xf32>
    %18 = arith.subf %17, %3 : vector<8x128xf32>
    %19 = math.log %18 : vector<8x128xf32>
    %cst_10 = arith.constant -1.000000e+02 : f32
    %20 = vector.broadcast %cst_10 : f32 to vector<8x128xf32>
    %21 = arith.maximumf %19, %20 : vector<8x128xf32>
    %22 = arith.mulf %13, %16 : vector<8x128xf32>
    %cst_11 = arith.constant 1.000000e+00 : f32
    %23 = vector.broadcast %cst_11 : f32 to vector<8x128xf32>
    %24 = arith.subf %23, %13 : vector<8x128xf32>
    %25 = arith.mulf %24, %21 : vector<8x128xf32>
    %26 = arith.addf %22, %25 : vector<8x128xf32>
    %cst_12 = arith.constant 0.000000e+00 : f32
    %27 = vector.broadcast %cst_12 : f32 to vector<8x128xf32>
    %28 = arith.subf %27, %26 : vector<8x128xf32>
    %cst_13 = arith.constant 1.000000e+00 : f32
    %29 = vector.broadcast %cst_13 : f32 to vector<8x128xf32>
    %30 = arith.cmpf oeq, %13, %29 : vector<8x128xf32>
    %cst_14 = arith.constant 1.000000e+00 : f32
    %31 = vector.broadcast %cst_14 : f32 to vector<8x128xf32>
    %32 = arith.subf %31, %3 : vector<8x128xf32>
    %33 = arith.select %30, %32, %3 : vector<8x128xi1>, vector<8x128xf32>
    %34 = arith.mulf %33, %33 : vector<8x128xf32>
    %35 = arith.mulf %34, %28 : vector<8x128xf32>
    %36 = arith.mulf %9, %35 : vector<8x128xf32>
    %c0_15 = arith.constant 0 : index
    %c0_16 = arith.constant 0 : index
    %37 = vector.load %arg6[%c0_15, %c0_16] : memref<8x128xf32, #tpu.memory_space<vmem>>, vector<8x128xf32>
    %38 = vector.shape_cast %36 : vector<8x128xf32> to vector<1x8x128xf32>
    %cst_17 = arith.constant dense<0.000000e+00> : vector<8x128xf32>
    %39 = vector.multi_reduction <add>, %38, %cst_17 [0] : vector<1x8x128xf32> to vector<8x128xf32>
    %40 = arith.addf %37, %39 : vector<8x128xf32>
    %c0_18 = arith.constant 0 : index
    %c0_19 = arith.constant 0 : index
    %41 = vector.load %arg6[%c0_18, %c0_19] : memref<8x128xf32, #tpu.memory_space<vmem>>, vector<8x128xf32>
    tpu.vector_store %arg6[%c0_18, %c0_19], %40 {strides = array<i32>} : memref<8x128xf32, #tpu.memory_space<vmem>>, vector<8x128xf32>,
    %c0_20 = arith.constant 0 : index
    %c0_21 = arith.constant 0 : index
    %42 = vector.load %arg7[%c0_20, %c0_21] : memref<8x128xf32, #tpu.memory_space<vmem>>, vector<8x128xf32>
    %cst_22 = arith.constant 1.000000e+00 : f32
    %cst_23 = arith.constant 0.000000e+00 : f32
    %43 = vector.broadcast %cst_22 : f32 to vector<8x128xf32>
    %44 = vector.broadcast %cst_23 : f32 to vector<8x128xf32>
    %45 = arith.select %6, %43, %44 : vector<8x128xi1>, vector<8x128xf32>
    %46 = vector.shape_cast %45 : vector<8x128xf32> to vector<1x8x128xf32>
    %cst_24 = arith.constant dense<0.000000e+00> : vector<8x128xf32>
    %47 = vector.multi_reduction <add>, %46, %cst_24 [0] : vector<1x8x128xf32> to vector<8x128xf32>
    %48 = arith.addf %42, %47 : vector<8x128xf32>
    %c0_25 = arith.constant 0 : index
    %c0_26 = arith.constant 0 : index
    %49 = vector.load %arg7[%c0_25, %c0_26] : memref<8x128xf32, #tpu.memory_space<vmem>>, vector<8x128xf32>
    tpu.vector_store %arg7[%c0_25, %c0_26], %48 {strides = array<i32>} : memref<8x128xf32, #tpu.memory_space<vmem>>, vector<8x128xf32>,
    %c0_i32_27 = arith.constant 0 : i32
    %50 = arith.cmpi eq, %arg1, %c0_i32_27 : i32
    %51 = arith.extui %50 : i1 to i32
    %c0_i32_28 = arith.constant 0 : i32
    %52 = arith.cmpi ne, %51, %c0_i32_28 : i32
    scf.if %52 {
      %c0_29 = arith.constant 0 : index
      %c0_30 = arith.constant 0 : index
      %53 = vector.load %arg6[%c0_29, %c0_30] : memref<8x128xf32, #tpu.memory_space<vmem>>, vector<8x128xf32>
      %c0_31 = arith.constant 0 : index
      %c0_32 = arith.constant 0 : index
      %c0_33 = arith.constant 0 : index
      %54 = vector.load %arg4[%c0_31, %c0_32, %c0_33] : memref<1x8x128xf32, #tpu.memory_space<vmem>>, vector<1x8x128xf32>
      %55 = vector.shape_cast %54 : vector<1x8x128xf32> to vector<8x128xf32>
      %56 = vector.shape_cast %53 : vector<8x128xf32> to vector<1x8x128xf32>
      tpu.vector_store %arg4[%c0_31, %c0_32, %c0_33], %56 {strides = array<i32>} : memref<1x8x128xf32, #tpu.memory_space<vmem>>, vector<1x8x128xf32>,
      %c0_34 = arith.constant 0 : index
      %c0_35 = arith.constant 0 : index
      %57 = vector.load %arg7[%c0_34, %c0_35] : memref<8x128xf32, #tpu.memory_space<vmem>>, vector<8x128xf32>
      %c0_36 = arith.constant 0 : index
      %c0_37 = arith.constant 0 : index
      %c0_38 = arith.constant 0 : index
      %58 = vector.load %arg5[%c0_36, %c0_37, %c0_38] : memref<1x8x128xf32, #tpu.memory_space<vmem>>, vector<1x8x128xf32>
      %59 = vector.shape_cast %58 : vector<1x8x128xf32> to vector<8x128xf32>
      %60 = vector.shape_cast %57 : vector<8x128xf32> to vector<1x8x128xf32>
      tpu.vector_store %arg5[%c0_36, %c0_37, %c0_38], %60 {strides = array<i32>} : memref<1x8x128xf32, #tpu.memory_space<vmem>>, vector<1x8x128xf32>,
    } else {
    }
    return
  }
  func.func @transform_0(%arg0: i32, %arg1: i32) -> (i32, i32) {
    %c1_i32 = arith.constant 1 : i32
    %0 = arith.muli %arg0, %c1_i32 : i32
    %1 = arith.addi %0, %arg1 : i32
    %c0_i32 = arith.constant 0 : i32
    %c0_i32_0 = arith.constant 0 : i32
    return %1, %c0_i32 : i32, i32
  }
  func.func @transform_1(%arg0: i32, %arg1: i32) -> (i32, i32) {
    %c1_i32 = arith.constant 1 : i32
    %0 = arith.muli %arg0, %c1_i32 : i32
    %1 = arith.addi %0, %arg1 : i32
    %c0_i32 = arith.constant 0 : i32
    %c0_i32_0 = arith.constant 0 : i32
    return %1, %c0_i32 : i32, i32
  }
  func.func @transform_2(%arg0: i32, %arg1: i32) -> (i32, i32, i32) {
    %c0_i32 = arith.constant 0 : i32
    %c0_i32_0 = arith.constant 0 : i32
    %c0_i32_1 = arith.constant 0 : i32
    return %arg0, %c0_i32, %c0_i32_0 : i32, i32, i32
  }
  func.func @transform_3(%arg0: i32, %arg1: i32) -> (i32, i32, i32) {
    %c0_i32 = arith.constant 0 : i32
    %c0_i32_0 = arith.constant 0 : i32
    %c0_i32_1 = arith.constant 0 : i32
    return %arg0, %c0_i32, %c0_i32_0 : i32, i32, i32
  }
}

</mosaic_0001>

<bundles_post_ra>
// kernel: tpu_custom_call.1
= control target key start
LH: loop header
LB: loop body
LE: loop exit
PB: predicated region body
PF: predicated region fallthrough
CT: control target
= control target key end

     0   :  { %9 = vsyncpa [#allocation5], 0  ;;  %s1030_s0 = inlined_call_operand.hbm [shape: f32[16,128], index: 0, kind: input, shape index: {}]   ;;  %s1031_s1 = inlined_call_operand.hbm [shape: f32[16,128], index: 1, kind: input, shape index: {}]   ;;  %s1032_s2 = inlined_call_operand.hbm [shape: f32[2,8,128], index: 2, kind: output, shape index: {0}]   ;;  %s1033_s3 = inlined_call_operand.hbm [shape: f32[2,8,128], index: 3, kind: output, shape index: {1}]  }
   0x1   :  { %11 = vsyncpa [#allocation5 + $0x1], 0 }
   0x2   :  { %12 = vsyncpa [#allocation8], 0 }
   0x3   :  { %14 = vsyncpa [#allocation8 + $0x1], 0 }
   0x4   :  { %15 = vsyncpa [#allocation6], 0 }
   0x5   :  { %17 = vsyncpa [#allocation6 + $0x1], 0 }
   0x6   :  { %18 = vsyncpa [#allocation11], 0 }
   0x7   :  { %20 = vsyncpa [#allocation11 + $0x1], 0  ;;  %s769_s12 = smov 0   ;;  %s771_s13 = smov 0  }
   0x8   :  { %s773_s14 = smov 0   ;;  %s775_s15 = smov 0  }
   0x9   :  { %s777_s16 = smov 0   ;;  %s779_s17 = smov 0  }
   0xa LB: > { %s466_s18 = sadd.s32 4294967295, %s741_s17   ;;  %s467_s19 = sadd.s32 4294967294, %s741_s17   ;;  %s741_s17 = sphi %s779_s17, %s26_s17   ;;  %s737_s16 = sphi %s777_s16, %s1053_s16   ;;  %s733_s15 = sphi %s775_s15, %s1052_s15   ;;  %s729_s14 = sphi %s773_s14, %s1051_s14   ;;  %s725_s13 = sphi %s771_s13, %s1050_s13   ;;  %s721_s12 = sphi %s769_s12, %s1049_s12  }
   0xb   : > { %s38_s20 = sadd.s32 1, %s737_s16  ;;  %s47_s21 = sadd.s32 1, %s729_s14 }
   0xc   : > { %p40_p0 = scmp.ge.s32.totalorder %s38_s20, 2  ;;  %p54_p1 = scmp.ne.s32.totalorder %s729_s14, %s725_s13 }
   0xd   : > { %p55_p2 = scmp.eq.s32.totalorder %s741_s17, 0  ;;  %p60_p3 = scmp.ne.s32.totalorder %s725_s13, %s721_s12 }
   0xe   : > { %s1055_s20 = smov (%p40_p0, %s38_s20), 0  ;;  %p61_p5 = scmp.eq.s32.totalorder %s466_s18, 0 }
   0xf   : > { %p810_p4 = por %p55_p2, %p54_p1  ;;  %s44_s23 = ssub.s32 %s737_s16, %s1055_s20 }
  0x10   : > { %p112_p6 = scmp.eq.s32.totalorder %s466_s18, 1  ;;  %p45_p7 = scmp.eq.s32.totalorder %s44_s23, 0 }
  0x11   : > { %p816_p8 = por %p61_p5, %p60_p3  ;;  %p118_p10 = scmp.eq.s32.totalorder %s467_s19, 1 }
  0x12   : > { %p820_p9 = por %p112_p6, %p54_p1  ;;  %p507_p13 = scmp.lt.s32.totalorder %s741_s17, 2 }
  0x13   : > { %s1037_s24 = scalar_select %p816_p8, 1, 0 }
  0x14   : > { %s1038_s25 = scalar_select %p820_p9, 1, 0 }
  0x15   : > { %s825_s26 = scalar_select %p45_p7, %s729_s14, %s47_s21  }
  0x16   : > { %p827_p11 = por %p118_p10, %p60_p3  ;;  %s834_s28 = sand.u32 1, %s729_s14  }
  0x17   : > { %s470_s29 = sshll.u32 %s834_s28, 3  ;;  %s471_s30 = sshll.u32 %s737_s16, 7 }
  0x18   : > { %s1039_s27 = scalar_select %p827_p11, 1, 0 }
  0x19   : > { %s843_s6 = scalar_lea.hbm %s1030_s0, %s471_s30  ;;  %s168_s7 = scalar_lea.vmem [#allocation4], %s470_s29 }
  0x1a   : > { %s176_s8 = sshll.u32 %s168_s7, 4  ;;  %p851_p0 = pnand %p507_p13, %p810_p4  ;;  %s847_s8 = int_to_ptr.vmem [resolvable:$true] %s176_s8 }
  0x1b   : > { %s165_s10 = scalar_lea.sflag [#allocation5], %s834_s28  ;;  %s563_s11 = scalar_lea.hbm %s843_s6, 128 }
  0x1c   : > { %p564_p3 = scmp.ne.s32.totalorder %s843_s6, %s563_s11  ;;  %p565_p5 = pneg %p851_p0 }
  0x1d   : > { %s568_s21 = scalar_lea.hbm %s1030_s0, 256  ;;  %p569_p4 = scmp.lt.u32.totalorder %s843_s6, %s1030_s0 }
  0x1e   : > { %p566_p6 = pnand %p565_p5, %p564_p3  ;;  %p570_p10 = scmp.lt.u32.totalorder %s568_s21, %s563_s11 }
  0x1f   : > { %p572_p12 = scmp.lt.u32.totalorder %s563_s11, %s843_s6 }
  0x20   : > { %p567_p7 = pneg %p566_p6  ;;  %p571_p13 = por %p570_p10, %p569_p4 }
  0x22   : > { %p573_p1 = por %p572_p12, %p571_p13 }
  0x24   : > { %p574_p2 = pnand %p573_p1, %p567_p7 }
  0x26   : > { %577 = shalt.err (!%p574_p2)
}
  0x27   : > { %s578_s4 = scalar_lea.vmem %s847_s8, 128  ;;  %s743_s5 = smov [#allocation4]  }
  0x28   : > { %p579_p3 = scmp.ne.s32.totalorder %s847_s8, %s578_s4  ;;  %s583_s7 = sshll.u32 %s743_s5, 4  ;;  %s584_s7 = int_to_ptr.vmem [resolvable:$false] %s583_s7 }
  0x29   : > { %s585_s18 = scalar_lea.vmem %s584_s7, 256  ;;  %p586_p9 = scmp.lt.s32.totalorder %s847_s8, %s584_s7 }
  0x2a   : > { %p581_p6 = pnand %p579_p3, %p565_p5  ;;  %p587_p4 = scmp.lt.s32.totalorder %s585_s18, %s578_s4 }
  0x2c   : > { %p582_p11 = pneg %p581_p6  ;;  %p588_p10 = por %p587_p4, %p586_p9 }
  0x2e   : > { %p589_p12 = pnand %p588_p10, %p582_p11 }
  0x30   : > { %592 = shalt.err (!%p589_p12)
}
  0x31   : > { %496 = dma.hbm_to_vmem [thread:$0]  (!%p851_p0), %s843_s6, 128, %s847_s8, %s165_s10  }
  0x32   : > { %p1041_p1 = scmp.lt.s32.totalorder %s741_s17, 3  ;;  %p1042_p2 = scmp.ge.s32.totalorder %s741_s17, 1 }
  0x33   : > { %s896_s22 = scalar_lea.hbm %s1031_s1, %s471_s30  ;;  %s187_s23 = scalar_lea.vmem [#allocation7], %s470_s29 }
  0x34   : > { %p887_p7 = pnand %p1042_p2, %p1041_p1  ;;  %s195_s4 = sshll.u32 %s187_s23, 4  ;;  %s196_s4 = int_to_ptr.vmem [resolvable:$true] %s195_s4 }
  0x35   : > { %s184_s6 = scalar_lea.sflag [#allocation8], %s834_s28  ;;  %s593_s8 = scalar_lea.hbm %s896_s22, 128 }
  0x36   : > { %s1043_s11 = scalar_select %p887_p7, 1, 0 }
  0x37   : > { %p594_p9 = scmp.ne.s32.totalorder %s896_s22, %s593_s8  ;;  %s598_s30 = scalar_lea.hbm %s1031_s1, 256 }
  0x38   : > { %p599_p3 = scmp.lt.u32.totalorder %s896_s22, %s1031_s1  ;;  %p600_p6 = scmp.lt.u32.totalorder %s598_s30, %s593_s8 }
  0x39   : > { %p596_p11 = pnand %p594_p9, %p565_p5  ;;  %p602_p10 = scmp.lt.u32.totalorder %s593_s8, %s896_s22 }
  0x3a   : > { %p601_p4 = por %p600_p6, %p599_p3 }
  0x3b   : > { %p597_p13 = pneg %p596_p11 }
  0x3c   : > { %p603_p12 = por %p602_p10, %p601_p4 }
  0x3e   : > { %p604_p1 = pnand %p603_p12, %p597_p13 }
  0x40   : > { %607 = shalt.err (!%p604_p1)
}
  0x41   : > { %s608_s28 = scalar_lea.vmem %s196_s4, 128  ;;  %s744_s29 = smov [#allocation7]  }
  0x42   : > { %p609_p2 = scmp.ne.s32.totalorder %s196_s4, %s608_s28  ;;  %s613_s19 = sshll.u32 %s744_s29, 4  ;;  %s614_s19 = int_to_ptr.vmem [resolvable:$false] %s613_s19 }
  0x43   : > { %s615_s21 = scalar_lea.vmem %s614_s19, 256  ;;  %p616_p8 = scmp.lt.s32.totalorder %s196_s4, %s614_s19 }
  0x44   : > { %p611_p9 = pnand %p609_p2, %p565_p5  ;;  %p617_p7 = scmp.lt.s32.totalorder %s615_s21, %s608_s28 }
  0x46   : > { %p612_p11 = pneg %p611_p9  ;;  %p618_p3 = por %p617_p7, %p616_p8 }
  0x48   : > { %p619_p6 = pnand %p618_p3, %p612_p11 }
  0x4a   : > { %622 = shalt.err (!%p619_p6)
}
  0x4b   : > { %499 = dma.hbm_to_vmem [thread:$0]  (!%p851_p0), %s896_s22, 128, %s196_s4, %s184_s6  }
  0x4c   : > { %p1044_p13 = scmp.ne.s32.totalorder %s1043_s11, 0 }
  0x4d   : > { %s923_s23 = sand.u32 (!%p1044_p13), 1, %s725_s13   ;;  %p1045_p8 = scmp.ne.s32.totalorder (!%p1044_p13), %s1037_s24, 0 }
  0x4e   : > { %204 = sbr.rel (%p1044_p13) target bundleno = 143 (0x8f), region = 28  ;;  %s926_s8 = sshll.u32 (!%p1044_p13), %s923_s23, 3 }
  0x4f   : > { %s207_s10 = scalar_lea.sflag (!%p1044_p13), [#allocation5], %s923_s23  ;;  %s210_s5 = scalar_lea.vmem (!%p1044_p13), [#allocation4], %s926_s8 }
  0x55   : > { %704 = dma.done.wait (%p1045_p8), %s207_s10, 128  }
  0x56   : > { %706 = vsyncadd (%p1045_p8), %s207_s10, 4294967168  ;;  %s216_s9 = scalar_lea.sflag [#allocation8], %s923_s23  ;;  %s219_s11 = scalar_lea.vmem [#allocation7], %s926_s8 }
  0x57   : > { %708 = dma.done.wait (%p1045_p8), %s216_s9, 128  }
  0x58   : > { %710 = vsyncadd (%p1045_p8), %s216_s9, 4294967168  ;;  %s251_s22 = scalar_lea.vmem [#allocation10], %s926_s8  ;;  %s481_s6 = sshll.u32 %s733_s15, 7  ;;  %v260_v0 = vld [vmem:[%s210_s5] sm:$0xff]  ;;  %v261_v1 = vld [vmem:[%s219_s11] sm:$0xff]  ;;  %v745_v3 = vmov 0.0  }
  0x59   : > { %s331_s4 = sshll.u32 %s251_s22, 4  ;;  %vm262_vm0 = vcmp.eq.f32.partialorder %v261_v1, 1.0  ;;  %559 = vlog2.f32 %v260_v0  ;;  %v269_v2 = vsub.f32 1.0, %v260_v0  ;;  %s949_s7 = scalar_lea.hbm %s1033_s3, %s481_s6  ;;  %s942_s4 = int_to_ptr.vmem [resolvable:$true] %s331_s4 }
  0x5a   : > { %v288_v4 = vsel %vm262_vm0, 1.0, %v745_v3  ;;  %s305_s18 = scalar_lea.sflag [#allocation11], %s923_s23  ;;  %s623_s28 = scalar_lea.vmem %s942_s4, 128 }
  0x5b   : > { %561 = vlog2.f32 %v269_v2  ;;  %298 = vst [vmem:[%s251_s22] sm:$0xff] %v288_v4  ;;  %p624_p0 = scmp.ne.s32.totalorder %s942_s4, %s623_s28  ;;  %p1046_p5 = scmp.ne.s32.totalorder %s1038_s25, 0 }
  0x5c   : > { %s746_s29 = smov [#allocation10]  }
  0x5d   : > { %p625_p7 = pnand %p624_p0, %p1046_p5  ;;  %s627_s19 = sshll.u32 %s746_s29, 4  ;;  %s628_s19 = int_to_ptr.vmem [resolvable:$false] %s627_s19 }
  0x5e   : > { %s629_s21 = scalar_lea.vmem %s628_s19, 256  ;;  %p630_p10 = scmp.lt.s32.totalorder %s942_s4, %s628_s19 }
  0x5f   : > { %p626_p4 = pneg %p625_p7  ;;  %p631_p12 = scmp.lt.s32.totalorder %s629_s21, %s623_s28 }
  0x61   : > { %p632_p1 = por %p631_p12, %p630_p10 }
  0x63   : > { %p633_p2 = pnand %p632_p1, %p626_p4 }
  0x65   : > { %636 = shalt.err (!%p633_p2)
}
  0x66   : > { %s637_s10 = scalar_lea.hbm %s949_s7, 128  ;;  %s641_s11 = scalar_lea.hbm %s1033_s3, 256 }
  0x67   : > { %p638_p9 = scmp.ne.s32.totalorder %s949_s7, %s637_s10  ;;  %p642_p6 = scmp.lt.u32.totalorder %s949_s7, %s1033_s3 }
  0x68   : > { %p643_p13 = scmp.lt.u32.totalorder %s641_s11, %s637_s10  ;;  %p645_p0 = scmp.lt.u32.totalorder %s637_s10, %s949_s7 }
  0x69   : > { %p639_p11 = pnand %p638_p9, %p1046_p5 }
  0x6a   : > { %p644_p8 = por %p643_p13, %p642_p6 }
  0x6b   : > { %p640_p3 = pneg %p639_p11 }
  0x6c   : > { %p646_p7 = por %p645_p0, %p644_p8 }
  0x6e   : > { %p647_p4 = pnand %p646_p7, %p640_p3 }
  0x70   : > { %650 = shalt.err (!%p647_p4)
}
  0x71   : > { %490 = dma.vmem_to_hbm [thread:$0]  (%p1046_p5), %s942_s4, 128, %s949_s7, %s305_s18   ;;  %v264_v5 = vmax.f32 %v261_v1, 0.1  ;;  %v560_v7 = vpop.eup %559  ;;  %v747_v20 = vmov 0.75  }
  0x72   : > { %v267_v8 = vmul.f32 0.6931472, %v560_v7  ;;  %v562_v9 = vpop.eup %561  ;;  %s244_s4 = scalar_lea.vmem [#allocation9], %s926_s8  ;;  %v263_v21 = vsel %vm262_vm0, 0.25, %v747_v20  ;;  %s983_s28 = scalar_lea.hbm %s1032_s2, %s481_s6 }
  0x73   : > { %v265_v6 = vmin.f32 %v264_v5, 0.9  ;;  %v271_v11 = vmul.f32 0.6931472, %v562_v9  ;;  %s318_s30 = sshll.u32 %s244_s4, 4  ;;  %s300_s29 = scalar_lea.sflag [#allocation6], %s923_s23  ;;  %s976_s30 = int_to_ptr.vmem [resolvable:$true] %s318_s30 }
  0x74   : > { %v268_v10 = vmax.f32 %v267_v8, -100.0  ;;  %s651_s8 = scalar_lea.vmem %s976_s30, 128  ;;  %s748_s19 = smov [#allocation9]  }
  0x75   : > { %v274_v12 = vsub.f32 1.0, %v265_v6  ;;  %vm278_vm1 = vcmp.eq.f32.partialorder %v265_v6, 1.0  ;;  %v272_v13 = vmax.f32 %v271_v11, -100.0  ;;  %p652_p10 = scmp.ne.s32.totalorder %s976_s30, %s651_s8  ;;  %s655_s21 = sshll.u32 %s748_s19, 4  ;;  %s656_s21 = int_to_ptr.vmem [resolvable:$false] %s655_s21 }
  0x76   : > { %v273_v14 = vmul.f32 %v268_v10, %v265_v6  ;;  %v279_v15 = vsel %vm278_vm1, %v269_v2, %v260_v0  ;;  %s657_s10 = scalar_lea.vmem %s656_s21, 256  ;;  %p658_p2 = scmp.lt.s32.totalorder %s976_s30, %s656_s21 }
  0x77   : > { %v275_v16 = vmul.f32 %v274_v12, %v272_v13  ;;  %v280_v18 = vmul.f32 %v279_v15, %v279_v15  ;;  %p653_p12 = pnand %p652_p10, %p1046_p5  ;;  %p659_p9 = scmp.lt.s32.totalorder %s657_s10, %s651_s8 }
  0x79   : > { %v276_v17 = vadd.f32 %v275_v16, %v273_v14  ;;  %p654_p1 = pneg %p653_p12  ;;  %p660_p11 = por %p659_p9, %p658_p2 }
  0x7b   : > { %v277_v19 = vsub.f32 0.0, %v276_v17  ;;  %p661_p3 = pnand %p660_p11, %p654_p1 }
  0x7d   : > { %v281_v22 = vmul.f32 %v280_v18, %v277_v19 }
  0x7f   : > { %v282_v23 = vmul.f32 %v281_v22, %v263_v21 }
  0x81   : > { %296 = vst [vmem:[%s244_s4] sm:$0xff] %v282_v23 }
  0x82   : > { %664 = shalt.err (!%p661_p3)
}
  0x83   : > { %s665_s15 = scalar_lea.hbm %s983_s28, 128  ;;  %s669_s5 = scalar_lea.hbm %s1032_s2, 256 }
  0x84   : > { %p666_p6 = scmp.ne.s32.totalorder %s983_s28, %s665_s15  ;;  %p670_p0 = scmp.lt.u32.totalorder %s983_s28, %s1032_s2 }
  0x85   : > { %p671_p7 = scmp.lt.u32.totalorder %s669_s5, %s665_s15  ;;  %p673_p10 = scmp.lt.u32.totalorder %s665_s15, %s983_s28 }
  0x86   : > { %p667_p13 = pnand %p666_p6, %p1046_p5 }
  0x87   : > { %p672_p4 = por %p671_p7, %p670_p0 }
  0x88   : > { %p668_p8 = pneg %p667_p13 }
  0x89   : > { %p674_p12 = por %p673_p10, %p672_p4 }
  0x8b   : > { %p675_p1 = pnand %p674_p12, %p668_p8 }
  0x8d   : > { %678 = shalt.err (!%p675_p1)
}
  0x8e   : > { %489 = dma.vmem_to_hbm [thread:$0]  (%p1046_p5), %s976_s30, 128, %s983_s28, %s300_s29  }
  0x8f PF: > { %s343_s22 = sand.u32 1, %s721_s12   ;;  %p1047_p2 = scmp.ne.s32.totalorder %s1039_s27, 0 }
  0x90   : > { %p1048_p9 = scmp.ge.s32.totalorder %s741_s17, 2  ;;  %s344_s24 = scalar_lea.sflag [#allocation6], %s343_s22 }
  0x92   : > { %p501_p11 = pnand %p1048_p9, %p1047_p2 }
  0x94   : > { %712 = dma.done.wait (!%p501_p11), %s344_s24, 128  }
  0x95   : > { %714 = vsyncadd (!%p501_p11), %s344_s24, 4294967168  ;;  %s353_s4 = scalar_lea.sflag [#allocation11], %s343_s22 }
  0x96   : > { %716 = dma.done.wait (!%p501_p11), %s353_s4, 128  }
  0x97   : > { %718 = vsyncadd (!%p501_p11), %s353_s4, 4294967168  ;;  %s26_s17 = sadd.s32 1, %s741_s17   ;;  %s1049_s12 = smov %s725_s13 }
  0x98   : > { %p23_p3 = scmp.ge.s32.totalorder %s26_s17, 4   ;;  %s1050_s13 = smov %s729_s14 }
  0x99   : > { %s1051_s14 = smov %s825_s26  ;;  %s1052_s15 = smov %s737_s16 }
  0x9a   : > { %s1053_s16 = smov %s1055_s20  ;;  %25 = sbr.rel (!%p23_p3) target bundleno = 10 (0xa), region = 111 }
  0xa1   :  { %358 = vsyncpa [#allocation5], 1 }
  0xa2   :  { %360 = vsyncpa [#allocation5 + $0x1], 1 }
  0xa3   :  { %361 = vsyncpa [#allocation8], 1 }
  0xa4   :  { %363 = vsyncpa [#allocation8 + $0x1], 1 }
  0xa5   :  { %364 = vsyncpa [#allocation6], 1 }
  0xa6   :  { %366 = vsyncpa [#allocation6 + $0x1], 1 }
  0xa7   :  { %367 = vsyncpa [#allocation11], 1 }
  0xa8   :  { %369 = vsyncpa [#allocation11 + $0x1], 1 }

</bundles_post_ra>
